<compile_context>
chip_gen: v6e
topology: v6e:2x2x1
jax: 0.10.0
libtpu: 0.0.40
codegen_flags: <defaults>
</compile_context>

<pallas_src>
import jax
import jax.numpy as jnp
from jax.experimental import pallas as pl
from jax.experimental.pallas import tpu as pltpu


LANES = 128                   # vreg lane width (last dim)
_FAST_PATH_MAX_N = 1 << 20    # below this, fused jnp beats pallas_call overhead
_VMEM_CAP_BYTES = 48 * 2**20  # safe under v7x's 64 MiB per-TC VMEM


def _sublane_multiple(dtype):
    # Minimum packed-tile sublane count per element width.
    return {4: 8, 2: 16, 1: 32}.get(jnp.dtype(dtype).itemsize, 8)


def _linear_kernel(w_ref, x_ref, o_ref):
    # w_ref : SMEM (2,) f32 scalar weights
    # x_ref : VMEM (2, tile_rows, 128) stacked column planes (lane-dense)
    # o_ref : VMEM (tile_rows, 128)
    acc = (w_ref[0] * x_ref[0].astype(jnp.float32)
           + w_ref[1] * x_ref[1].astype(jnp.float32))
    o_ref[...] = acc.astype(o_ref.dtype)


def _linear_model_impl(x, w1, w2, *, max_tile_rows=8192, force_kernel=False):
    if x.ndim != 2 or x.shape[1] < 2:
        raise ValueError(f"expected x of shape (N, F>=2), got {x.shape}")

    n = x.shape[0]
    out_dtype = x.dtype

    w1f = jnp.asarray(w1, jnp.float32).reshape(())
    w2f = jnp.asarray(w2, jnp.float32).reshape(())

    # --- Small-N fast path: one XLA elementwise fusion is the traffic minimum.
    if n < _FAST_PATH_MAX_N and not force_kernel:
        y = (w1f * x[:, 0:1].astype(jnp.float32)
             + w2f * x[:, 1:2].astype(jnp.float32))
        return y.astype(out_dtype)

    # --- Kernel path: pack the batch along the 128-lane axis.
    sub = _sublane_multiple(out_dtype)
    rows = -(-n // LANES)                                 # ceil(N / 128)
    tile_rows = ((rows + sub - 1) // sub) * sub           # dtype-aligned rows
    tile_rows = max(sub, min(int(max_tile_rows), tile_rows))
    tile_rows = ((tile_rows + sub - 1) // sub) * sub
    rows_pad = ((rows + tile_rows - 1) // tile_rows) * tile_rows
    n_pad = rows_pad * LANES

    # One stacked (2, rows_pad, 128) stream for the two used columns.
    xs = jnp.stack([x[:, 0], x[:, 1]], axis=0)
    pad = n_pad - n
    if pad:
        xs = jnp.pad(xs, ((0, 0), (0, pad)))
    xs = xs.reshape(2, rows_pad, LANES)

    w = jnp.stack([w1f, w2f])                             # SMEM scalars

    itemsize = jnp.dtype(out_dtype).itemsize
    in_bytes = 2 * tile_rows * LANES * itemsize
    out_bytes = tile_rows * LANES * itemsize
    # ~3x double-buffered residency as headroom, capped well under v7x VMEM.
    vmem_limit = int(min(_VMEM_CAP_BYTES,
                         max(4 * 2**20, 3 * (in_bytes + out_bytes))))

    grid = (rows_pad // tile_rows,)

    out = pl.pallas_call(
        _linear_kernel,
        out_shape=jax.ShapeDtypeStruct((rows_pad, LANES), out_dtype),
        grid=grid,
        in_specs=[
            pl.BlockSpec(memory_space=pltpu.MemorySpace.SMEM),          # weights
            pl.BlockSpec((2, tile_rows, LANES), lambda i: (0, i, 0)),   # columns
        ],
        out_specs=pl.BlockSpec((tile_rows, LANES), lambda i: (i, 0)),
        compiler_params=pltpu.CompilerParams(
            dimension_semantics=("parallel",),
            vmem_limit_bytes=vmem_limit,
        ),
    )(w, xs)

    # Unpack lane-dense result back to the PyTorch (N, 1) layout (fused by jit).
    return out.reshape(n_pad)[:n].reshape(n, 1)


linear_model = jax.jit(_linear_model_impl,
                       static_argnames=("max_tile_rows", "force_kernel"))


def _reference(x, w1, w2):
    xf = x.astype(jnp.float32)
    return (jnp.asarray(w1, jnp.float32) * xf[:, 0:1]
            + jnp.asarray(w2, jnp.float32) * xf[:, 1:2])


if __name__ == "__main__":
    key = jax.random.PRNGKey(0)
    kx1, kx2, kx3, kw = jax.random.split(key, 4)

    # Deterministic parameters (mirrors torch.randn(1) for w1, w2).
    wvals = jax.random.normal(kw, (2,), dtype=jnp.float32)
    w1, w2 = wvals[0], wvals[1]

    # Case 1: small shape consistent with the module's forward; force the
    # Pallas kernel path so it is actually exercised at small N.
    N1, F1 = 8, 4
    xa = jax.random.normal(kx1, (N1, F1), dtype=jnp.float32)
    out_a = linear_model(xa, w1, w2, force_kernel=True)
    jax.block_until_ready(out_a)
    ref_a = _reference(xa, w1, w2)
    assert out_a.shape == (N1, 1)
    assert jnp.allclose(out_a, ref_a, atol=1e-5), "mismatch vs reference (small)"

    # Case 2: non-multiple-of-128 batch, tiny tile -> multi-step pipelined grid.
    N2, F2 = 3000, 5
    xb = jax.random.normal(kx2, (N2, F2), dtype=jnp.float32)
    out_b = linear_model(xb, w1, w2, max_tile_rows=8, force_kernel=True)
    jax.block_until_ready(out_b)
    ref_b = _reference(xb, w1, w2)
    assert out_b.shape == (N2, 1)
    assert jnp.allclose(out_b, ref_b, atol=1e-5), "mismatch vs reference (tiled)"

    # Case 3: bf16 input -> dtype-dependent (16, 128) sublane rounding.
    N3, F3 = 300, 3
    xc = jax.random.normal(kx3, (N3, F3), dtype=jnp.float32).astype(jnp.bfloat16)
    out_c = linear_model(xc, w1, w2, force_kernel=True)
    jax.block_until_ready(out_c)
    ref_c = _reference(xc, w1, w2)
    assert out_c.shape == (N3, 1)
    assert jnp.allclose(out_c.astype(jnp.float32), ref_c, atol=5e-2), \
        "mismatch vs reference (bf16)"

    # Case 4: default (fast) path — fused jnp, no pallas_call.
    out_d = linear_model(xa, w1, w2)
    jax.block_until_ready(out_d)
    assert jnp.allclose(out_d, ref_a, atol=1e-5), "mismatch vs reference (fast path)"

    print("KERNEL_OK")
</pallas_src>

<mosaic_0001>
module attributes {stable_mosaic.version = 11 : i64} {
  func.func @_linear_kernel(%arg0: i32, %arg1: memref<2xf32, #tpu.memory_space<smem>>, %arg2: memref<2x8x128xf32, #tpu.memory_space<vmem>>, %arg3: memref<8x128xf32, #tpu.memory_space<vmem>>) attributes {dimension_semantics = [#tpu.dimension_semantics<parallel>], iteration_bounds = array<i64: 1>, scalar_prefetch = 0 : i64, scratch_operands = 0 : i64, tpu.core_type = #tpu.core_type<tc>, window_params = [{transform_indices = @transform_0, window_bounds = array<i64: 2>}, {transform_indices = @transform_1, window_bounds = array<i64: 2, 8, 128>}, {transform_indices = @transform_2, window_bounds = array<i64: 8, 128>}]} {
    %c0 = arith.constant 0 : index
    %0 = memref.load %arg1[%c0] : memref<2xf32, #tpu.memory_space<smem>>
    %c0_0 = arith.constant 0 : index
    %c0_1 = arith.constant 0 : index
    %c0_2 = arith.constant 0 : index
    %1 = vector.load %arg2[%c0_0, %c0_1, %c0_2] : memref<2x8x128xf32, #tpu.memory_space<vmem>>, vector<1x8x128xf32>
    %2 = vector.shape_cast %1 : vector<1x8x128xf32> to vector<8x128xf32>
    %3 = vector.broadcast %0 : f32 to vector<8x128xf32>
    %4 = arith.mulf %3, %2 : vector<8x128xf32>
    %c1 = arith.constant 1 : index
    %5 = memref.load %arg1[%c1] : memref<2xf32, #tpu.memory_space<smem>>
    %c1_3 = arith.constant 1 : index
    %c0_4 = arith.constant 0 : index
    %c0_5 = arith.constant 0 : index
    %6 = vector.load %arg2[%c1_3, %c0_4, %c0_5] : memref<2x8x128xf32, #tpu.memory_space<vmem>>, vector<1x8x128xf32>
    %7 = vector.shape_cast %6 : vector<1x8x128xf32> to vector<8x128xf32>
    %8 = vector.broadcast %5 : f32 to vector<8x128xf32>
    %9 = arith.mulf %8, %7 : vector<8x128xf32>
    %10 = arith.addf %4, %9 : vector<8x128xf32>
    %c0_6 = arith.constant 0 : index
    %c0_7 = arith.constant 0 : index
    %11 = vector.load %arg3[%c0_6, %c0_7] : memref<8x128xf32, #tpu.memory_space<vmem>>, vector<8x128xf32>
    tpu.vector_store %arg3[%c0_6, %c0_7], %10 {strides = array<i32>} : memref<8x128xf32, #tpu.memory_space<vmem>>, vector<8x128xf32>,
    return
  }
  func.func @transform_0(%arg0: i32) -> i32 {
    %c0_i32 = arith.constant 0 : i32
    %c0_i32_0 = arith.constant 0 : i32
    return %c0_i32 : i32
  }
  func.func @transform_1(%arg0: i32) -> (i32, i32, i32) {
    %c0_i32 = arith.constant 0 : i32
    %c0_i32_0 = arith.constant 0 : i32
    %c0_i32_1 = arith.constant 0 : i32
    return %c0_i32, %arg0, %c0_i32_0 : i32, i32, i32
  }
  func.func @transform_2(%arg0: i32) -> (i32, i32) {
    %c0_i32 = arith.constant 0 : i32
    %c0_i32_0 = arith.constant 0 : i32
    return %arg0, %c0_i32 : i32, i32
  }
}

</mosaic_0001>

<bundles_post_ra>
// kernel: _linear_model_impl.1
= control target key start
LH: loop header
LB: loop body
LE: loop exit
PB: predicated region body
PF: predicated region fallthrough
CT: control target
= control target key end

     0   :  { %7 = vsyncpa [#allocation3], 0  ;;  %s85_s0 = inlined_call_operand.vmem [shape: f32[2], index: 0, kind: input, shape index: {}]   ;;  %s86_s1 = inlined_call_operand.vmem [shape: f32[2,8,128], index: 1, kind: input, shape index: {}]   ;;  %s87_s2 = inlined_call_operand.vmem [shape: f32[8,128], index: 2, kind: output, shape index: {}]  }
   0x1   :  { %s14_s11 = sshll.u32 %s85_s0, 4  ;;  %s15_s11 = int_to_ptr.vmem [resolvable:$true] %s14_s11 }
   0x2   :  { %s43_s12 = scalar_lea.vmem %s15_s11, 16  ;;  %p48_p1 = scmp.lt.s32.totalorder %s15_s11, %s15_s11 }
   0x3   :  { %p44_p0 = scmp.ne.s32.totalorder %s15_s11, %s43_s12  ;;  %p49_p2 = scmp.lt.s32.totalorder %s43_s12, %s43_s12 }
   0x5   :  { %p50_p3 = por %p49_p2, %p48_p1 }
   0x7   :  { %p51_p4 = pnand %p50_p3, %p44_p0 }
   0x9   :  { %54 = shalt.err (!%p51_p4)
}
   0xa   :  { %s57_s13 = smov [#allocation2]  }
   0xb   :  { %17 = dma.vmem_to_smem %s15_s11, 16, %s57_s13, [#allocation3]  }
   0xc   :  { %55 = dma.done.wait [#allocation3], 16  }
   0xd   :  { %56 = vsyncadd [#allocation3], 4294967280 }
   0xe   :  { %23 = sfence }
   0xf   :  { %s24_s14 = sld [smem:[#allocation2]]  ;;  %v25_v0 = vld [vmem:[%s86_s1] sm:$0xff]  ;;  %v41_v1 = vld [vmem:[%s86_s1 + $0x8] sm:$0xff] }
  0x10   :  { %s40_s15 = sld [smem:[#allocation2 + $0x1]] }
  0x15   :  { %v26_v2 = vstv %s24_s14 }
  0x16   :  { %v27_v3 = vmul.f32 %v26_v2, %v25_v0  ;;  %v31_v4 = vstv %s40_s15 }
  0x17   :  { %v32_v5 = vmul.f32 %v41_v1, %v31_v4 }
  0x19   :  { %v33_v6 = vadd.f32 %v32_v5, %v27_v3 }
  0x1b   :  { %34 = vst [vmem:[%s87_s2] sm:$0xff] %v33_v6 }
  0x1c   :  { %39 = vsyncpa [#allocation3], 1 }

</bundles_post_ra>
